<compile_context>
chip_gen: v7x
topology: tpu7x:2x2x1
jax: 0.10.0
libtpu: 0.0.40
codegen_flags: <defaults>
</compile_context>

<pallas_src>
import functools

import jax
import jax.numpy as jnp
from jax.experimental import pallas as pl
from jax.experimental.pallas import tpu as pltpu

_LANES = 128
_MIN_SPLIT_B = 256  # only consider a 2-way core split when each core gets >=128 rows


def _round_up(n, m):
    return ((n + m - 1) // m) * m


def _num_tensorcores_per_chip():
    # Best-effort: v7x exposes 2 TensorCores per chip; v5e/v6e have 1 (grid = serial loop).
    try:
        kind = jax.devices()[0].device_kind.lower()
    except Exception:
        return 1
    return 2 if "v7" in kind else 1


def _mlp_kernel(x_ref, w1_ref, b1_ref, w2_ref, b2_ref, w3_ref, b3_ref, o_ref):
    cdt = w1_ref.dtype
    # x stays fp32 in HBM/VMEM; the cast to the compute dtype happens here (VPU work
    # hidden under the MXU) instead of as a separate XLA pass in the wrapper.
    x = x_ref[...].astype(cdt)
    h1 = jnp.dot(x, w1_ref[...], preferred_element_type=jnp.float32) + b1_ref[...]
    h1 = jnp.maximum(h1, 0.0).astype(cdt)
    h2 = jnp.dot(h1, w2_ref[...], preferred_element_type=jnp.float32) + b2_ref[...]
    h2 = jnp.maximum(h2, 0.0).astype(cdt)
    out = jnp.dot(h2, w3_ref[...], preferred_element_type=jnp.float32) + b3_ref[...]
    o_ref[...] = out.astype(o_ref.dtype)


def prepare_params(params, use_bf16=True):
    """One-time preparation (call OUTSIDE the hot loop):
      * pad fc3 to a lane-dense multiple of 128 output columns,
      * cast weights to the compute dtype (bf16 by default), biases stay fp32.
    Returns (prepared_params, action_dim)."""
    w1, b1 = params["w1"], params["b1"]
    w2, b2 = params["w2"], params["b2"]
    w3, b3 = params["w3"], params["b3"]
    action_dim = w3.shape[1]
    a_pad = _round_up(action_dim, _LANES)
    if a_pad != action_dim:
        w3 = jnp.pad(w3, ((0, 0), (0, a_pad - action_dim)))
        b3 = jnp.pad(b3, ((0, 0), (0, a_pad - action_dim)))
    cdt = jnp.bfloat16 if use_bf16 else jnp.float32
    prepared = {
        "w1": w1.astype(cdt), "b1": b1.astype(jnp.float32),
        "w2": w2.astype(cdt), "b2": b2.astype(jnp.float32),
        "w3": w3.astype(cdt), "b3": b3.astype(jnp.float32),
    }
    return prepared, action_dim


@functools.partial(
    jax.jit,
    static_argnames=("action_dim", "block_b", "slice_output", "out_dtype"))
def qnetwork_mlp_forward(x, params, *, action_dim, block_b=1024,
                         slice_output=True, out_dtype=None):
    """Fused 3-layer MLP forward on TPU via a single pallas_call.

    x: (B, state_dim) float32.
    params: output of prepare_params() -- w1 (S,H), b1 (1,H), w2 (H,H), b2 (1,H),
            w3 (H,A_pad), b3 (1,A_pad); weights in the compute dtype, biases fp32.
    slice_output=False returns the (B_pad, 128) padded array (avoids an extra HBM
    slice pass when the consumer can slice lazily); padded rows/cols are not valid
    Q-values.
    """
    w1, b1 = params["w1"], params["b1"]
    w2, b2 = params["w2"], params["b2"]
    w3, b3 = params["w3"], params["b3"]

    B, S = x.shape
    H = w1.shape[1]
    A_pad = w3.shape[1]
    out_dtype = x.dtype if out_dtype is None else jnp.dtype(out_dtype)

    # --- pick the batch tile: big, balanced, minimally padded --------------------
    min_steps = 2 if (B >= _MIN_SPLIT_B and _num_tensorcores_per_chip() >= 2) else 1
    n_steps = max(min_steps, -(-B // block_b))
    per_step = -(-B // n_steps)
    bb = _round_up(per_step, 16)                 # sublane / bf16-pack alignment
    bb128 = _round_up(per_step, _LANES)
    if bb128 - bb <= 32:                         # take MXU-M/128 alignment when ~free
        bb = bb128
    B_pad = n_steps * bb
    if B_pad != B:
        x = jnp.pad(x, ((0, B_pad - B), (0, 0)))

    def _const(shape):
        # Same block every grid step -> single-buffer (saves VMEM + DMA descriptors).
        return pl.BlockSpec(shape, lambda i: (0, 0), pipeline_mode=pl.Buffered(1))

    def _bytes(a):
        return a.size * a.dtype.itemsize

    cost = pl.CostEstimate(
        flops=2 * B_pad * (S * H + H * H + H * A_pad),
        transcendentals=0,
        bytes_accessed=int(
            _bytes(x)
            + sum(_bytes(a) for a in (w1, b1, w2, b2, w3, b3))
            + B_pad * A_pad * out_dtype.itemsize),
    )

    out = pl.pallas_call(
        _mlp_kernel,
        out_shape=jax.ShapeDtypeStruct((B_pad, A_pad), out_dtype),
        grid_spec=pltpu.PrefetchScalarGridSpec(
            num_scalar_prefetch=0,
            grid=(n_steps,),
            in_specs=[
                pl.BlockSpec((bb, S), lambda i: (i, 0)),   # batch tile of the input
                _const((S, H)), _const((1, H)),            # fc1
                _const((H, H)), _const((1, H)),            # fc2
                _const((H, A_pad)), _const((1, A_pad)),    # fc3 (lane-padded)
            ],
            out_specs=pl.BlockSpec((bb, A_pad), lambda i: (i, 0)),
        ),
        compiler_params=pltpu.CompilerParams(
            dimension_semantics=("parallel",),
        ),
        cost_estimate=cost,
    )(x, w1, b1, w2, b2, w3, b3)

    if slice_output:
        return out[:B, :action_dim]
    return out


def init_params(key, state_dim, action_dim, hidden_dim=128, dtype=jnp.float32):
    """Deterministic init mimicking nn.Linear's U(-1/sqrt(fan_in), 1/sqrt(fan_in))."""
    keys = jax.random.split(key, 6)

    def linear(kw, kb, fan_in, fan_out):
        bound = 1.0 / jnp.sqrt(jnp.asarray(fan_in, dtype))
        # stored as (in, out) so the kernel does x @ W
        w = jax.random.uniform(kw, (fan_in, fan_out), dtype, -bound, bound)
        b = jax.random.uniform(kb, (1, fan_out), dtype, -bound, bound)
        return w, b

    w1, b1 = linear(keys[0], keys[1], state_dim, hidden_dim)
    w2, b2 = linear(keys[2], keys[3], hidden_dim, hidden_dim)
    w3, b3 = linear(keys[4], keys[5], hidden_dim, action_dim)
    return {"w1": w1, "b1": b1, "w2": w2, "b2": b2, "w3": w3, "b3": b3}


def reference_forward(x, params):
    h1 = jnp.maximum(x @ params["w1"] + params["b1"], 0.0)
    h2 = jnp.maximum(h1 @ params["w2"] + params["b2"], 0.0)
    return h2 @ params["w3"] + params["b3"]


if __name__ == "__main__":
    key = jax.random.PRNGKey(0)
    k_param, k_x1, k_x2 = jax.random.split(key, 3)

    state_dim = 16
    action_dim = 4
    hidden_dim = 128

    params = init_params(k_param, state_dim, action_dim, hidden_dim)

    # --- fp32 path, tiny batch (single grid step, bb rounded to 16) ---------------
    p_f32, adim = prepare_params(params, use_bf16=False)
    x_small = jax.random.normal(k_x1, (8, state_dim), jnp.float32)
    out_f32 = jax.block_until_ready(
        qnetwork_mlp_forward(x_small, p_f32, action_dim=adim))
    ref_small = reference_forward(x_small, params)
    assert out_f32.shape == (8, action_dim)
    assert jnp.allclose(out_f32, ref_small, atol=1e-4, rtol=1e-4), "fp32 mismatch"

    # --- bf16 weights / fp32 accumulation, ragged batch over multiple balanced steps
    p_bf16, adim = prepare_params(params, use_bf16=True)
    x_big = jax.random.normal(k_x2, (260, state_dim), jnp.float32)
    out_bf16 = jax.block_until_ready(
        qnetwork_mlp_forward(x_big, p_bf16, action_dim=adim, block_b=128))
    ref_big = reference_forward(x_big, params)
    assert out_bf16.shape == (260, action_dim)
    assert jnp.allclose(out_bf16, ref_big, atol=5e-2, rtol=5e-2), "bf16 mismatch"

    # --- padded / un-sliced output path (consumer slices lazily) -------------------
    out_padded = jax.block_until_ready(
        qnetwork_mlp_forward(x_big, p_bf16, action_dim=adim, block_b=128,
                             slice_output=False))
    assert out_padded.shape[1] == 128 and out_padded.shape[0] >= 260
    assert jnp.allclose(out_padded[:260, :action_dim], ref_big,
                        atol=5e-2, rtol=5e-2), "padded-output mismatch"

    print("KERNEL_OK")
</pallas_src>

<mosaic_0001>
module attributes {stable_mosaic.version = 11 : i64} {
  func.func @_mlp_kernel(%arg0: i32, %arg1: memref<16x16xf32, #tpu.memory_space<vmem>>, %arg2: memref<16x128xf32, #tpu.memory_space<vmem>>, %arg3: memref<1x128xf32, #tpu.memory_space<vmem>>, %arg4: memref<128x128xf32, #tpu.memory_space<vmem>>, %arg5: memref<1x128xf32, #tpu.memory_space<vmem>>, %arg6: memref<128x128xf32, #tpu.memory_space<vmem>>, %arg7: memref<1x128xf32, #tpu.memory_space<vmem>>, %arg8: memref<16x128xf32, #tpu.memory_space<vmem>>) attributes {dimension_semantics = [#tpu.dimension_semantics<parallel>], iteration_bounds = array<i64: 1>, scalar_prefetch = 0 : i64, scratch_operands = 0 : i64, tpu.core_type = #tpu.core_type<tc>, window_params = [{transform_indices = @transform_0, window_bounds = array<i64: 16, 16>}, {pipeline_mode = #tpu.pipeline_mode<synchronous>, transform_indices = @transform_1, window_bounds = array<i64: 16, 128>}, {pipeline_mode = #tpu.pipeline_mode<synchronous>, transform_indices = @transform_2, window_bounds = array<i64: 1, 128>}, {pipeline_mode = #tpu.pipeline_mode<synchronous>, transform_indices = @transform_3, window_bounds = array<i64: 128, 128>}, {pipeline_mode = #tpu.pipeline_mode<synchronous>, transform_indices = @transform_4, window_bounds = array<i64: 1, 128>}, {pipeline_mode = #tpu.pipeline_mode<synchronous>, transform_indices = @transform_5, window_bounds = array<i64: 128, 128>}, {pipeline_mode = #tpu.pipeline_mode<synchronous>, transform_indices = @transform_6, window_bounds = array<i64: 1, 128>}, {transform_indices = @transform_7, window_bounds = array<i64: 16, 128>}]} {
    %c0 = arith.constant 0 : index
    %c0_0 = arith.constant 0 : index
    %0 = vector.load %arg1[%c0, %c0_0] : memref<16x16xf32, #tpu.memory_space<vmem>>, vector<16x16xf32>
    %c0_1 = arith.constant 0 : index
    %c0_2 = arith.constant 0 : index
    %1 = vector.load %arg2[%c0_1, %c0_2] : memref<16x128xf32, #tpu.memory_space<vmem>>, vector<16x128xf32>
    %cst = arith.constant dense<0.000000e+00> : vector<16x128xf32>
    %2 = tpu.matmul %0, %1, %cst {dimension_numbers = #tpu.dot_dimension_numbers<[1], [0], [0], [1], [0, 0, 1, 1], [], []>} : vector<16x16xf32>, vector<16x128xf32>, vector<16x128xf32> -> vector<16x128xf32>
    %c0_3 = arith.constant 0 : index
    %c0_4 = arith.constant 0 : index
    %3 = vector.load %arg3[%c0_3, %c0_4] : memref<1x128xf32, #tpu.memory_space<vmem>>, vector<1x128xf32>
    %4 = vector.broadcast %3 : vector<1x128xf32> to vector<16x128xf32>
    %5 = arith.addf %2, %4 : vector<16x128xf32>
    %cst_5 = arith.constant 0.000000e+00 : f32
    %6 = vector.broadcast %cst_5 : f32 to vector<16x128xf32>
    %7 = arith.maximumf %5, %6 : vector<16x128xf32>
    %c0_6 = arith.constant 0 : index
    %c0_7 = arith.constant 0 : index
    %8 = vector.load %arg4[%c0_6, %c0_7] : memref<128x128xf32, #tpu.memory_space<vmem>>, vector<128x128xf32>
    %cst_8 = arith.constant dense<0.000000e+00> : vector<16x128xf32>
    %9 = tpu.matmul %7, %8, %cst_8 {dimension_numbers = #tpu.dot_dimension_numbers<[1], [0], [0], [1], [0, 0, 1, 1], [], []>} : vector<16x128xf32>, vector<128x128xf32>, vector<16x128xf32> -> vector<16x128xf32>
    %c0_9 = arith.constant 0 : index
    %c0_10 = arith.constant 0 : index
    %10 = vector.load %arg5[%c0_9, %c0_10] : memref<1x128xf32, #tpu.memory_space<vmem>>, vector<1x128xf32>
    %11 = vector.broadcast %10 : vector<1x128xf32> to vector<16x128xf32>
    %12 = arith.addf %9, %11 : vector<16x128xf32>
    %cst_11 = arith.constant 0.000000e+00 : f32
    %13 = vector.broadcast %cst_11 : f32 to vector<16x128xf32>
    %14 = arith.maximumf %12, %13 : vector<16x128xf32>
    %c0_12 = arith.constant 0 : index
    %c0_13 = arith.constant 0 : index
    %15 = vector.load %arg6[%c0_12, %c0_13] : memref<128x128xf32, #tpu.memory_space<vmem>>, vector<128x128xf32>
    %cst_14 = arith.constant dense<0.000000e+00> : vector<16x128xf32>
    %16 = tpu.matmul %14, %15, %cst_14 {dimension_numbers = #tpu.dot_dimension_numbers<[1], [0], [0], [1], [0, 0, 1, 1], [], []>} : vector<16x128xf32>, vector<128x128xf32>, vector<16x128xf32> -> vector<16x128xf32>
    %c0_15 = arith.constant 0 : index
    %c0_16 = arith.constant 0 : index
    %17 = vector.load %arg7[%c0_15, %c0_16] : memref<1x128xf32, #tpu.memory_space<vmem>>, vector<1x128xf32>
    %18 = vector.broadcast %17 : vector<1x128xf32> to vector<16x128xf32>
    %19 = arith.addf %16, %18 : vector<16x128xf32>
    %c0_17 = arith.constant 0 : index
    %c0_18 = arith.constant 0 : index
    %20 = vector.load %arg8[%c0_17, %c0_18] : memref<16x128xf32, #tpu.memory_space<vmem>>, vector<16x128xf32>
    tpu.vector_store %arg8[%c0_17, %c0_18], %19 {strides = array<i32>} : memref<16x128xf32, #tpu.memory_space<vmem>>, vector<16x128xf32>,
    return
  }
  func.func @transform_0(%arg0: i32) -> (i32, i32) {
    %c0_i32 = arith.constant 0 : i32
    %c0_i32_0 = arith.constant 0 : i32
    return %arg0, %c0_i32 : i32, i32
  }
  func.func @transform_1(%arg0: i32) -> (i32, i32) {
    %c0_i32 = arith.constant 0 : i32
    %c0_i32_0 = arith.constant 0 : i32
    %c0_i32_1 = arith.constant 0 : i32
    return %c0_i32, %c0_i32_0 : i32, i32
  }
  func.func @transform_2(%arg0: i32) -> (i32, i32) {
    %c0_i32 = arith.constant 0 : i32
    %c0_i32_0 = arith.constant 0 : i32
    %c0_i32_1 = arith.constant 0 : i32
    return %c0_i32, %c0_i32_0 : i32, i32
  }
  func.func @transform_3(%arg0: i32) -> (i32, i32) {
    %c0_i32 = arith.constant 0 : i32
    %c0_i32_0 = arith.constant 0 : i32
    %c0_i32_1 = arith.constant 0 : i32
    return %c0_i32, %c0_i32_0 : i32, i32
  }
  func.func @transform_4(%arg0: i32) -> (i32, i32) {
    %c0_i32 = arith.constant 0 : i32
    %c0_i32_0 = arith.constant 0 : i32
    %c0_i32_1 = arith.constant 0 : i32
    return %c0_i32, %c0_i32_0 : i32, i32
  }
  func.func @transform_5(%arg0: i32) -> (i32, i32) {
    %c0_i32 = arith.constant 0 : i32
    %c0_i32_0 = arith.constant 0 : i32
    %c0_i32_1 = arith.constant 0 : i32
    return %c0_i32, %c0_i32_0 : i32, i32
  }
  func.func @transform_6(%arg0: i32) -> (i32, i32) {
    %c0_i32 = arith.constant 0 : i32
    %c0_i32_0 = arith.constant 0 : i32
    %c0_i32_1 = arith.constant 0 : i32
    return %c0_i32, %c0_i32_0 : i32, i32
  }
  func.func @transform_7(%arg0: i32) -> (i32, i32) {
    %c0_i32 = arith.constant 0 : i32
    %c0_i32_0 = arith.constant 0 : i32
    return %arg0, %c0_i32 : i32, i32
  }
}

</mosaic_0001>

<bundles_post_ra>
// kernel: qnetwork_mlp_forward.1
= control target key start
LH: loop header
LB: loop body
LE: loop exit
PB: predicated region body
PF: predicated region fallthrough
CT: control target
= control target key end

     0   :  { %12 = vsyncpa [#allocation3], 0  ;;  %s694_s0 = inlined_call_operand.vmem [shape: f32[16,16], index: 0, kind: input, shape index: {}]   ;;  %s695_s1 = inlined_call_operand.vmem [shape: f32[16,128], index: 1, kind: input, shape index: {}]   ;;  %s696_s2 = inlined_call_operand.vmem [shape: f32[1,128], index: 2, kind: input, shape index: {}]   ;;  %s697_s3 = inlined_call_operand.hbm [shape: f32[128,128], index: 3, kind: input, shape index: {}]   ;;  %s698_s4 = inlined_call_operand.vmem [shape: f32[1,128], index: 4, kind: input, shape index: {}]   ;;  %s699_s5 = inlined_call_operand.hbm [shape: f32[128,128], index: 5, kind: input, shape index: {}]   ;;  %s700_s6 = inlined_call_operand.vmem [shape: f32[1,128], index: 6, kind: input, shape index: {}]   ;;  %s701_s7 = inlined_call_operand.vmem [shape: f32[16,128], index: 7, kind: output, shape index: {}]  }
   0x1   :  { %13 = vsyncpa [#allocation5], 0  ;;  %s597_s24 = smov [#allocation2]   ;;  %s549_s28 = scalar_lea.hbm %s697_s3, 2048 }
   0x2   :  { %s25_s25 = sshll.u32 %s597_s24, 4  ;;  %p550_p0 = scmp.ne.s32.totalorder %s697_s3, %s549_s28  ;;  %s26_s25 = int_to_ptr.vmem [resolvable:$true] %s25_s25 }
   0x3   :  { %p553_p1 = scmp.lt.u32.totalorder %s549_s28, %s697_s3 }
   0x5   :  { %p555_p2 = pnand %p553_p1, %p550_p0 }
   0x7   :  { %558 = shalt.err (!%p555_p2)
}
   0x8   :  { %s559_s10 = scalar_lea.vmem %s26_s25, 2048  ;;  %p564_p4 = scmp.lt.s32.totalorder %s26_s25, %s26_s25 }
   0x9   :  { %p560_p3 = scmp.ne.s32.totalorder %s26_s25, %s559_s10  ;;  %p565_p5 = scmp.lt.s32.totalorder %s559_s10, %s559_s10 }
   0xb   :  { %p566_p6 = por %p565_p5, %p564_p4 }
   0xd   :  { %p567_p7 = pnand %p566_p6, %p560_p3 }
   0xf   :  { %570 = shalt.err (!%p567_p7)
}
  0x10   :  { %s598_s11 = smov 128   ;;  %s599_s12 = smov 8  }
  0x11   :  { %31 = dma.hbm_to_vmem [thread:$0]  %s697_s3, 2048, %s26_s25, [#allocation3], %s598_s11, %s598_s11, %s599_s12  }
  0x12   :  { %s600_s15 = smov [#allocation4]   ;;  %s571_s19 = scalar_lea.hbm %s699_s5, 2048 }
  0x13   :  { %s39_s16 = sshll.u32 %s600_s15, 4  ;;  %p572_p8 = scmp.ne.s32.totalorder %s699_s5, %s571_s19  ;;  %s40_s16 = int_to_ptr.vmem [resolvable:$true] %s39_s16 }
  0x14   :  { %p575_p9 = scmp.lt.u32.totalorder %s571_s19, %s699_s5 }
  0x16   :  { %p577_p10 = pnand %p575_p9, %p572_p8 }
  0x18   :  { %580 = shalt.err (!%p577_p10)
}
  0x19   :  { %s581_s24 = scalar_lea.vmem %s40_s16, 2048  ;;  %p586_p12 = scmp.lt.s32.totalorder %s40_s16, %s40_s16 }
  0x1a   :  { %p582_p11 = scmp.ne.s32.totalorder %s40_s16, %s581_s24  ;;  %p587_p13 = scmp.lt.s32.totalorder %s581_s24, %s581_s24 }
  0x1c   :  { %p588_p0 = por %p587_p13, %p586_p12 }
  0x1e   :  { %p589_p1 = pnand %p588_p0, %p582_p11 }
  0x20   :  { %592 = shalt.err (!%p589_p1)
}
  0x21   :  { %45 = dma.hbm_to_vmem [thread:$0]  %s699_s5, 2048, %s40_s16, [#allocation5], %s598_s11, %s598_s11, %s599_s12  }
  0x22   :  { %593 = dma.done.wait [#allocation3], 2048  }
  0x23   :  { %594 = vsyncadd [#allocation3], 4294965248 }
  0x24   :  { %595 = dma.done.wait [#allocation5], 2048  }
  0x25   :  { %596 = vsyncadd [#allocation5], 4294965248  ;;  %vm65_vm0 = vcmask 130048   ;;  %v56_v0 = vld [vmem:[%s695_s1] sm:$0xff]  ;;  %v57_v1 = vld [vmem:[%s695_s1 + $0x8] sm:$0xff] }
  0x26   :  { %v54_v2 = vld [vmem:[%s694_s0] sm:$0xff]  ;;  %v477_v3 = vpack.c.bf16 %v57_v1, %v56_v0  ;;  %v149_v4 = vld [vmem:[#allocation2] sm:$0xff]  ;;  %v150_v5 = vld [vmem:[#allocation2 + $0x8] sm:$0xff] }
  0x27   :  { %404 = vmatprep.mubr.msk.f32.mxu0 %vm65_vm0, %v54_v2  ;;  %v481_v6 = vpack.c.bf16 %v150_v5, %v149_v4  ;;  %v151_v7 = vld [vmem:[#allocation2 + $0x10] sm:$0xff]  ;;  %v152_v8 = vld [vmem:[#allocation2 + $0x18] sm:$0xff]  ;;  %v153_v10 = vld [vmem:[#allocation2 + $0x20] sm:$0xff] }
  0x28   :  { %478 = vmatprep.subr.bf16.mxu0 %v477_v3  ;;  %v485_v9 = vpack.c.bf16 %v152_v8, %v151_v7  ;;  %v154_v11 = vld [vmem:[#allocation2 + $0x28] sm:$0xff]  ;;  %v55_v12 = vld [vmem:[%s694_s0 + $0x8] sm:$0xff]  ;;  %v155_v14 = vld [vmem:[#allocation2 + $0x30] sm:$0xff] }
  0x29   :  { %480 = vmatpush3.bf16.msra.mxu0 %v477_v3  ;;  %482 = vmatprep.subr.bf16.mxu1 %v481_v6  ;;  %v489_v13 = vpack.c.bf16 %v154_v11, %v153_v10  ;;  %v156_v15 = vld [vmem:[#allocation2 + $0x38] sm:$0xff]  ;;  %v157_v17 = vld [vmem:[#allocation2 + $0x40] sm:$0xff]  ;;  %v158_v18 = vld [vmem:[#allocation2 + $0x48] sm:$0xff] }
  0x2a   :  { %484 = vmatpush3.bf16.msra.mxu1 %v481_v6  ;;  %v493_v16 = vpack.c.bf16 %v156_v15, %v155_v14  ;;  %v497_v19 = vpack.c.bf16 %v158_v18, %v157_v17  ;;  %v159_v20 = vld [vmem:[#allocation2 + $0x50] sm:$0xff]  ;;  %v160_v21 = vld [vmem:[#allocation2 + $0x58] sm:$0xff]  ;;  %v161_v23 = vld [vmem:[#allocation2 + $0x60] sm:$0xff] }
  0x2b   :  { %486 = vmatprep.subr.bf16.mxu1 %v485_v9  ;;  %v501_v22 = vpack.c.bf16 %v160_v21, %v159_v20  ;;  %v162_v24 = vld [vmem:[#allocation2 + $0x68] sm:$0xff]  ;;  %v163_v26 = vld [vmem:[#allocation2 + $0x70] sm:$0xff]  ;;  %v164_v27 = vld [vmem:[#allocation2 + $0x78] sm:$0xff] }
  0x2c   :  { %405 = vmatmul.mubr.msk.f32.vlgmr.msra.gmra.mrb[0].mxu0 %vm65_vm0, %v55_v12  ;;  %v505_v25 = vpack.c.bf16 %v162_v24, %v161_v23  ;;  %v509_v28 = vpack.c.bf16 %v164_v27, %v163_v26  ;;  %v249_v29 = vld [vmem:[#allocation4] sm:$0xff]  ;;  %v250_v30 = vld [vmem:[#allocation4 + $0x8] sm:$0xff]  ;;  %v251_v31 = vld [vmem:[#allocation4 + $0x10] sm:$0xff] }
  0x2d   :  { %v513_v32 = vpack.c.bf16 %v250_v30, %v249_v29  ;;  %v252_v33 = vld [vmem:[#allocation4 + $0x18] sm:$0xff]  ;;  %v253_v35 = vld [vmem:[#allocation4 + $0x20] sm:$0xff]  ;;  %v254_v36 = vld [vmem:[#allocation4 + $0x28] sm:$0xff] }
  0x2e   :  { %488 = vmatpush3.bf16.msra.mxu1 %v485_v9  ;;  %v517_v34 = vpack.c.bf16 %v252_v33, %v251_v31  ;;  %v521_v37 = vpack.c.bf16 %v254_v36, %v253_v35  ;;  %v255_v38 = vld [vmem:[#allocation4 + $0x30] sm:$0xff]  ;;  %v256_v39 = vld [vmem:[#allocation4 + $0x38] sm:$0xff]  ;;  %v257_v41 = vld [vmem:[#allocation4 + $0x40] sm:$0xff] }
  0x2f   :  { %490 = vmatprep.subr.bf16.mxu1 %v489_v13  ;;  %514 = vmatprep.subr.bf16.mxu0 %v513_v32  ;;  %v525_v40 = vpack.c.bf16 %v256_v39, %v255_v38  ;;  %v258_v42 = vld [vmem:[#allocation4 + $0x48] sm:$0xff]  ;;  %v259_v44 = vld [vmem:[#allocation4 + $0x50] sm:$0xff]  ;;  %v260_v45 = vld [vmem:[#allocation4 + $0x58] sm:$0xff] }
  0x30   :  { %516 = vmatpush3.bf16.msra.mxu0 %v513_v32  ;;  %v529_v43 = vpack.c.bf16 %v258_v42, %v257_v41  ;;  %v533_v46 = vpack.c.bf16 %v260_v45, %v259_v44  ;;  %v261_v47 = vld [vmem:[#allocation4 + $0x60] sm:$0xff]  ;;  %v262_v48 = vld [vmem:[#allocation4 + $0x68] sm:$0xff]  ;;  %v355_v50 = vld [vmem:[%s696_s2] ss:$0 sm:$0xff] }
  0x31   :  { %518 = vmatprep.subr.bf16.mxu0 %v517_v34  ;;  %v537_v49 = vpack.c.bf16 %v262_v48, %v261_v47  ;;  %v263_v57 = vld [vmem:[#allocation4 + $0x70] sm:$0xff]  ;;  %v264_v58 = vld [vmem:[#allocation4 + $0x78] sm:$0xff] }
  0x32   :  { %492 = vmatpush3.bf16.msra.mxu1 %v489_v13  ;;  %v541_v59 = vpack.c.bf16 %v264_v58, %v263_v57  ;;  %v358_v60 = vld [vmem:[%s698_s4] ss:$0 sm:$0xff] }
  0x33   :  { %494 = vmatprep.subr.bf16.mxu1 %v493_v16  ;;  %v359_v3 = vld [vmem:[%s700_s6] ss:$0 sm:$0xff] }
  0x34   :  { %520 = vmatpush3.bf16.msra.mxu0 %v517_v34 }
  0x35   :  { %522 = vmatprep.subr.bf16.mxu0 %v521_v37 }
  0x36   :  { %496 = vmatpush3.bf16.msra.mxu1 %v493_v16 }
  0x37   :  { %498 = vmatprep.subr.bf16.mxu1 %v497_v19 }
  0x38   :  { %524 = vmatpush3.bf16.msra.mxu0 %v521_v37 }
  0x39   :  { %526 = vmatprep.subr.bf16.mxu0 %v525_v40 }
  0x3a   :  { %500 = vmatpush3.bf16.msra.mxu1 %v497_v19 }
  0x3b   :  { %502 = vmatprep.subr.bf16.mxu1 %v501_v22 }
  0x3c   :  { %528 = vmatpush3.bf16.msra.mxu0 %v525_v40 }
  0x3d   :  { %530 = vmatprep.subr.bf16.mxu0 %v529_v43 }
  0x3e   :  { %504 = vmatpush3.bf16.msra.mxu1 %v501_v22 }
  0x3f   :  { %506 = vmatprep.subr.bf16.mxu1 %v505_v25 }
  0x40   :  { %532 = vmatpush3.bf16.msra.mxu0 %v529_v43 }
  0x41   :  { %534 = vmatprep.subr.bf16.mxu0 %v533_v46 }
  0x42   :  { %508 = vmatpush3.bf16.msra.mxu1 %v505_v25 }
  0x43   :  { %510 = vmatprep.subr.bf16.mxu1 %v509_v28 }
  0x44   :  { %536 = vmatpush3.bf16.msra.mxu0 %v533_v46 }
  0x45   :  { %538 = vmatprep.subr.bf16.mxu0 %v537_v49 }
  0x46   :  { %512 = vmatpush3.bf16.msra.mxu1 %v509_v28 }
  0x48   :  { %540 = vmatpush3.bf16.msra.mxu0 %v537_v49 }
  0x49   :  { %542 = vmatprep.subr.bf16.mxu0 %v541_v59 }
  0x4c   :  { %544 = vmatpush3.bf16.msra.mxu0 %v541_v59 }
  0xff   :  { %v406_v51 = vpop.f32.mrb[0].mxu0 }
 0x100   :  { %v144_v52 = vadd.f32 %v406_v51, %v355_v50  ;;  %v138_v53 = vpop.f32.mrb[1].mxu0 }
 0x101   :  { %v139_v54 = vadd.f32 %v355_v50, %v138_v53 }
 0x102   :  { %v148_v56 = vmax.f32 %v144_v52, 0.0 }
 0x103   :  { %v147_v55 = vmax.f32 %v139_v54, 0.0 }
 0x105   :  { %439 = vmatprep.mubr.f32.mxu1 %v147_v55 }
 0x106   :  { %440 = vmatmul.mubr.f32.vlgmr.msra.gmra.mrb[0].mxu1 %v148_v56 }
 0x1d9   :  { %v441_v61 = vpop.f32.mrb[0].mxu1 }
 0x1da   :  { %v244_v62 = vadd.f32 %v441_v61, %v358_v60  ;;  %v238_v63 = vpop.f32.mrb[1].mxu1 }
 0x1db   :  { %v239_v0 = vadd.f32 %v358_v60, %v238_v63 }
 0x1dc   :  { %v248_v2 = vmax.f32 %v244_v62, 0.0 }
 0x1dd   :  { %v247_v1 = vmax.f32 %v239_v0, 0.0 }
 0x1df   :  { %474 = vmatprep.mubr.f32.mxu0 %v247_v1 }
 0x1e0   :  { %475 = vmatmul.mubr.f32.vlgmr.msra.gmra.mrb[2].mxu0 %v248_v2 }
 0x2b3   :  { %v476_v4 = vpop.f32.mrb[2].mxu0 }
 0x2b4   :  { %v344_v5 = vadd.f32 %v476_v4, %v359_v3  ;;  %v338_v6 = vpop.f32.mrb[3].mxu0 }
 0x2b5   :  { %v339_v7 = vadd.f32 %v359_v3, %v338_v6 }
 0x2b6   :  { %348 = vst [vmem:[%s701_s7 + $0x8] sm:$0xff] %v344_v5 }
 0x2b7   :  { %347 = vst [vmem:[%s701_s7] sm:$0xff] %v339_v7 }
 0x2b8   :  { %353 = vsyncpa [#allocation3], 1 }
 0x2b9   :  { %354 = vsyncpa [#allocation5], 1 }

</bundles_post_ra>
